<compile_context>
chip_gen: v7x
topology: tpu7x:2x2x1
jax: 0.10.0
libtpu: 0.0.40
codegen_flags: <defaults>
</compile_context>

<pallas_src>
import math
import numpy as np
import jax
import jax.numpy as jnp
from jax.experimental import pallas as pl
from jax.experimental.pallas import tpu as pltpu


# ----------------------------------------------------------------------------
# Helpers matching the PyTorch module's table construction
# ----------------------------------------------------------------------------
def get_enc_len(x, base=2):
    x = int(x)
    l = 0
    while x > 0:
        l += 1
        x //= base
    return max(l, 1)


def int2multihot(x, enc_len, base=2):
    x = np.asarray(x, dtype=np.int64)
    out = np.zeros((x.shape[0], enc_len * base), dtype=np.float32)
    rows = np.arange(x.shape[0])
    rem = x.copy()
    for i in range(enc_len):
        digit = rem % base
        out[rows, i * base + digit] = 1.0
        rem //= base
    return out


def _round_up(a, b):
    return ((a + b - 1) // b) * b


# ----------------------------------------------------------------------------
# Kernel
# ----------------------------------------------------------------------------
def _multihot_kernel(idx_ref, enc_hbm, emb_ref, out_ref, enc_buf, sems):
    # idx_ref : SMEM (n_pad,) int32      scalar-prefetched node ids
    # enc_hbm : ANY  (V, E_pad)          frozen multi-hot encoding table (HBM)
    # emb_ref : VMEM (E_pad, D_pad)      projection matrix (resident, idx (0,0))
    # out_ref : VMEM (G, D_pad)          output block
    # enc_buf : VMEM (G, E_pad)          gathered encoding rows (scratch)
    # sems    : DMA semaphores (K,)      ring of in-flight row copies
    i = pl.program_id(0)
    g = out_ref.shape[0]
    k = sems.shape[0]
    base = i * g

    # Read all indices up front (scalar SMEM reads before any DMA wait).
    rows = [idx_ref[base + r] for r in range(g)]

    # Ring of K in-flight row gathers: HBM encoding row -> enc_buf row.
    pending = [None] * k
    for r in range(g):
        s = r % k
        if pending[s] is not None:
            pending[s].wait()
        cp = pltpu.make_async_copy(
            enc_hbm.at[pl.ds(rows[r], 1), :],
            enc_buf.at[pl.ds(r, 1), :],
            sems.at[s],
        )
        cp.start()
        pending[s] = cp
    for cp in pending:
        if cp is not None:
            cp.wait()

    # (G, E_pad) @ (E_pad, D_pad) on the MXU, dense (G, D_pad) store.
    out_ref[...] = jnp.dot(
        enc_buf[...], emb_ref[...], preferred_element_type=jnp.float32
    ).astype(out_ref.dtype)


# ----------------------------------------------------------------------------
# Wrapper == MultiHotEmbeddingLayer.forward(g, x)  (graph `g` is unused)
# ----------------------------------------------------------------------------
def multihot_embedding_forward(encoding_weight, embedding, x, *,
                               block_n=256, dma_ring=8):
    v, e = encoding_weight.shape
    e2, d = embedding.shape
    assert e == e2

    idx = jnp.squeeze(x).astype(jnp.int32)       # mimics x.squeeze()
    if idx.ndim == 0:
        idx = idx[None]
    idx = idx.reshape(-1)                        # mimics enc.view(-1, E)
    idx = jnp.clip(idx, 0, v - 1)                # guard data-dependent DMA addresses
    n = idx.shape[0]

    g = int(min(block_n, _round_up(n, 8)))
    g = max(8, _round_up(g, 8))                  # sublane-dense output blocks (f32)
    n_pad = _round_up(n, g)
    e_pad = _round_up(e, 128)                    # lane-dense rows / MXU-friendly K
    d_pad = _round_up(d, 128)                    # lane-dense (unmasked) output stores

    idx_pad = jnp.pad(idx, (0, n_pad - n))
    enc_pad = jnp.pad(encoding_weight.astype(jnp.float32), ((0, 0), (0, e_pad - e)))
    emb_pad = jnp.pad(embedding.astype(jnp.float32),
                      ((0, e_pad - e), (0, d_pad - d)))

    k = int(min(dma_ring, g))
    cost = pl.CostEstimate(
        flops=2 * n_pad * e_pad * d_pad,
        transcendentals=0,
        bytes_accessed=4 * (n_pad * e_pad + e_pad * d_pad + n_pad * d_pad),
    )

    out = pl.pallas_call(
        _multihot_kernel,
        out_shape=jax.ShapeDtypeStruct((n_pad, d_pad), jnp.float32),
        grid_spec=pltpu.PrefetchScalarGridSpec(
            num_scalar_prefetch=1,
            grid=(n_pad // g,),
            in_specs=[
                pl.BlockSpec(memory_space=pl.ANY),                    # encoding (HBM)
                pl.BlockSpec((e_pad, d_pad), lambda i, idx: (0, 0)),  # embedding (resident)
            ],
            out_specs=pl.BlockSpec((g, d_pad), lambda i, idx: (i, 0)),
            scratch_shapes=[
                pltpu.VMEM((g, e_pad), jnp.float32),
                pltpu.SemaphoreType.DMA((k,)),
            ],
        ),
        compiler_params=pltpu.CompilerParams(
            dimension_semantics=("parallel",),   # independent row blocks (v7x 2 TCs)
        ),
        cost_estimate=cost,
    )(idx_pad, enc_pad, emb_pad)

    return out[:n, :d]


# ----------------------------------------------------------------------------
if __name__ == "__main__":
    key = jax.random.PRNGKey(0)
    k_emb, k_idx = jax.random.split(key)

    num_emb, emb_dim, base = 64, 128, 2
    batch = 16

    enc_len = get_enc_len(num_emb - 1, base)
    e = enc_len * base

    # frozen multi-hot encoding table (nn.Embedding weight, requires_grad=False)
    encoding_weight = jnp.asarray(
        int2multihot(np.arange(num_emb), enc_len, base), dtype=jnp.float32)

    # trainable projection, uniform(-scale, scale) like the module init
    scale = 1.0 / math.sqrt(emb_dim * enc_len)
    embedding = jax.random.uniform(
        k_emb, (e, emb_dim), minval=-scale, maxval=scale, dtype=jnp.float32)

    # node-id input with trailing singleton dim, as at the PyTorch call site
    x = jax.random.randint(k_idx, (batch, 1), 0, num_emb, dtype=jnp.int32)

    out = multihot_embedding_forward(encoding_weight, embedding, x, block_n=8)
    out = jax.block_until_ready(out)

    # pure-JAX reference: encoding gather + matmul
    ref = encoding_weight[jnp.squeeze(x)] @ embedding
    assert out.shape == (batch, emb_dim)
    assert jnp.allclose(out, ref, atol=1e-5, rtol=1e-5)

    print("KERNEL_OK")
</pallas_src>

<mosaic_0001>
module attributes {stable_mosaic.version = 11 : i64} {
  func.func @_multihot_kernel(%arg0: i32, %arg1: memref<16xi32, #tpu.memory_space<smem>>, %arg2: memref<64x128xf32, #tpu.memory_space<any>>, %arg3: memref<128x128xf32, #tpu.memory_space<vmem>>, %arg4: memref<8x128xf32, #tpu.memory_space<vmem>>, %arg5: memref<8x128xf32, #tpu.memory_space<vmem>>, %arg6: memref<8x!tpu.dma_semaphore, #tpu.memory_space<semaphore_mem>>) attributes {dimension_semantics = [#tpu.dimension_semantics<parallel>], iteration_bounds = array<i64: 2>, scalar_prefetch = 1 : i64, scratch_operands = 2 : i64, tpu.core_type = #tpu.core_type<tc>, window_params = [{}, {pipeline_mode = #tpu.pipeline_mode<synchronous>, transform_indices = @transform_1, window_bounds = array<i64: 128, 128>}, {transform_indices = @transform_2, window_bounds = array<i64: 8, 128>}]} {
    %c8_i32 = arith.constant 8 : i32
    %0 = arith.muli %arg0, %c8_i32 : i32
    %c0_i32 = arith.constant 0 : i32
    %1 = arith.addi %0, %c0_i32 : i32
    %2 = arith.index_cast %1 : i32 to index
    %3 = memref.load %arg1[%2] : memref<16xi32, #tpu.memory_space<smem>>
    %c1_i32 = arith.constant 1 : i32
    %4 = arith.addi %0, %c1_i32 : i32
    %5 = arith.index_cast %4 : i32 to index
    %6 = memref.load %arg1[%5] : memref<16xi32, #tpu.memory_space<smem>>
    %c2_i32 = arith.constant 2 : i32
    %7 = arith.addi %0, %c2_i32 : i32
    %8 = arith.index_cast %7 : i32 to index
    %9 = memref.load %arg1[%8] : memref<16xi32, #tpu.memory_space<smem>>
    %c3_i32 = arith.constant 3 : i32
    %10 = arith.addi %0, %c3_i32 : i32
    %11 = arith.index_cast %10 : i32 to index
    %12 = memref.load %arg1[%11] : memref<16xi32, #tpu.memory_space<smem>>
    %c4_i32 = arith.constant 4 : i32
    %13 = arith.addi %0, %c4_i32 : i32
    %14 = arith.index_cast %13 : i32 to index
    %15 = memref.load %arg1[%14] : memref<16xi32, #tpu.memory_space<smem>>
    %c5_i32 = arith.constant 5 : i32
    %16 = arith.addi %0, %c5_i32 : i32
    %17 = arith.index_cast %16 : i32 to index
    %18 = memref.load %arg1[%17] : memref<16xi32, #tpu.memory_space<smem>>
    %c6_i32 = arith.constant 6 : i32
    %19 = arith.addi %0, %c6_i32 : i32
    %20 = arith.index_cast %19 : i32 to index
    %21 = memref.load %arg1[%20] : memref<16xi32, #tpu.memory_space<smem>>
    %c7_i32 = arith.constant 7 : i32
    %22 = arith.addi %0, %c7_i32 : i32
    %23 = arith.index_cast %22 : i32 to index
    %24 = memref.load %arg1[%23] : memref<16xi32, #tpu.memory_space<smem>>
    %c0_i32_0 = arith.constant 0 : i32
    %c0_i32_1 = arith.constant 0 : i32
    %25 = tpu.memref_slice %arg2[%3, %c0_i32_1] : memref<64x128xf32, #tpu.memory_space<any>> -> memref<1x128xf32, #tpu.memory_space<any>>
    %c0_i32_2 = arith.constant 0 : i32
    %c0_i32_3 = arith.constant 0 : i32
    %26 = tpu.memref_slice %arg5[%c0_i32_2, %c0_i32_3] : memref<8x128xf32, #tpu.memory_space<vmem>> -> memref<1x128xf32, #tpu.memory_space<vmem>>
    %27 = tpu.memref_slice %arg6[%c0_i32_0] : memref<8x!tpu.dma_semaphore, #tpu.memory_space<semaphore_mem>> -> memref<1x!tpu.dma_semaphore, #tpu.memory_space<semaphore_mem>>
    %28 = tpu.memref_squeeze %27 : memref<1x!tpu.dma_semaphore, #tpu.memory_space<semaphore_mem>> -> memref<!tpu.dma_semaphore, #tpu.memory_space<semaphore_mem>>
    tpu.enqueue_dma source(%25 : memref<1x128xf32, #tpu.memory_space<any>>) target(%26 : memref<1x128xf32, #tpu.memory_space<vmem>>) target_semaphore(%28 : memref<!tpu.dma_semaphore, #tpu.memory_space<semaphore_mem>>)
    %c1_i32_4 = arith.constant 1 : i32
    %c0_i32_5 = arith.constant 0 : i32
    %29 = tpu.memref_slice %arg2[%6, %c0_i32_5] : memref<64x128xf32, #tpu.memory_space<any>> -> memref<1x128xf32, #tpu.memory_space<any>>
    %c1_i32_6 = arith.constant 1 : i32
    %c0_i32_7 = arith.constant 0 : i32
    %30 = tpu.memref_slice %arg5[%c1_i32_6, %c0_i32_7] : memref<8x128xf32, #tpu.memory_space<vmem>> -> memref<1x128xf32, #tpu.memory_space<vmem>>
    %31 = tpu.memref_slice %arg6[%c1_i32_4] : memref<8x!tpu.dma_semaphore, #tpu.memory_space<semaphore_mem>> -> memref<1x!tpu.dma_semaphore, #tpu.memory_space<semaphore_mem>>
    %32 = tpu.memref_squeeze %31 : memref<1x!tpu.dma_semaphore, #tpu.memory_space<semaphore_mem>> -> memref<!tpu.dma_semaphore, #tpu.memory_space<semaphore_mem>>
    tpu.enqueue_dma source(%29 : memref<1x128xf32, #tpu.memory_space<any>>) target(%30 : memref<1x128xf32, #tpu.memory_space<vmem>>) target_semaphore(%32 : memref<!tpu.dma_semaphore, #tpu.memory_space<semaphore_mem>>)
    %c2_i32_8 = arith.constant 2 : i32
    %c0_i32_9 = arith.constant 0 : i32
    %33 = tpu.memref_slice %arg2[%9, %c0_i32_9] : memref<64x128xf32, #tpu.memory_space<any>> -> memref<1x128xf32, #tpu.memory_space<any>>
    %c2_i32_10 = arith.constant 2 : i32
    %c0_i32_11 = arith.constant 0 : i32
    %34 = tpu.memref_slice %arg5[%c2_i32_10, %c0_i32_11] : memref<8x128xf32, #tpu.memory_space<vmem>> -> memref<1x128xf32, #tpu.memory_space<vmem>>
    %35 = tpu.memref_slice %arg6[%c2_i32_8] : memref<8x!tpu.dma_semaphore, #tpu.memory_space<semaphore_mem>> -> memref<1x!tpu.dma_semaphore, #tpu.memory_space<semaphore_mem>>
    %36 = tpu.memref_squeeze %35 : memref<1x!tpu.dma_semaphore, #tpu.memory_space<semaphore_mem>> -> memref<!tpu.dma_semaphore, #tpu.memory_space<semaphore_mem>>
    tpu.enqueue_dma source(%33 : memref<1x128xf32, #tpu.memory_space<any>>) target(%34 : memref<1x128xf32, #tpu.memory_space<vmem>>) target_semaphore(%36 : memref<!tpu.dma_semaphore, #tpu.memory_space<semaphore_mem>>)
    %c3_i32_12 = arith.constant 3 : i32
    %c0_i32_13 = arith.constant 0 : i32
    %37 = tpu.memref_slice %arg2[%12, %c0_i32_13] : memref<64x128xf32, #tpu.memory_space<any>> -> memref<1x128xf32, #tpu.memory_space<any>>
    %c3_i32_14 = arith.constant 3 : i32
    %c0_i32_15 = arith.constant 0 : i32
    %38 = tpu.memref_slice %arg5[%c3_i32_14, %c0_i32_15] : memref<8x128xf32, #tpu.memory_space<vmem>> -> memref<1x128xf32, #tpu.memory_space<vmem>>
    %39 = tpu.memref_slice %arg6[%c3_i32_12] : memref<8x!tpu.dma_semaphore, #tpu.memory_space<semaphore_mem>> -> memref<1x!tpu.dma_semaphore, #tpu.memory_space<semaphore_mem>>
    %40 = tpu.memref_squeeze %39 : memref<1x!tpu.dma_semaphore, #tpu.memory_space<semaphore_mem>> -> memref<!tpu.dma_semaphore, #tpu.memory_space<semaphore_mem>>
    tpu.enqueue_dma source(%37 : memref<1x128xf32, #tpu.memory_space<any>>) target(%38 : memref<1x128xf32, #tpu.memory_space<vmem>>) target_semaphore(%40 : memref<!tpu.dma_semaphore, #tpu.memory_space<semaphore_mem>>)
    %c4_i32_16 = arith.constant 4 : i32
    %c0_i32_17 = arith.constant 0 : i32
    %41 = tpu.memref_slice %arg2[%15, %c0_i32_17] : memref<64x128xf32, #tpu.memory_space<any>> -> memref<1x128xf32, #tpu.memory_space<any>>
    %c4_i32_18 = arith.constant 4 : i32
    %c0_i32_19 = arith.constant 0 : i32
    %42 = tpu.memref_slice %arg5[%c4_i32_18, %c0_i32_19] : memref<8x128xf32, #tpu.memory_space<vmem>> -> memref<1x128xf32, #tpu.memory_space<vmem>>
    %43 = tpu.memref_slice %arg6[%c4_i32_16] : memref<8x!tpu.dma_semaphore, #tpu.memory_space<semaphore_mem>> -> memref<1x!tpu.dma_semaphore, #tpu.memory_space<semaphore_mem>>
    %44 = tpu.memref_squeeze %43 : memref<1x!tpu.dma_semaphore, #tpu.memory_space<semaphore_mem>> -> memref<!tpu.dma_semaphore, #tpu.memory_space<semaphore_mem>>
    tpu.enqueue_dma source(%41 : memref<1x128xf32, #tpu.memory_space<any>>) target(%42 : memref<1x128xf32, #tpu.memory_space<vmem>>) target_semaphore(%44 : memref<!tpu.dma_semaphore, #tpu.memory_space<semaphore_mem>>)
    %c5_i32_20 = arith.constant 5 : i32
    %c0_i32_21 = arith.constant 0 : i32
    %45 = tpu.memref_slice %arg2[%18, %c0_i32_21] : memref<64x128xf32, #tpu.memory_space<any>> -> memref<1x128xf32, #tpu.memory_space<any>>
    %c5_i32_22 = arith.constant 5 : i32
    %c0_i32_23 = arith.constant 0 : i32
    %46 = tpu.memref_slice %arg5[%c5_i32_22, %c0_i32_23] : memref<8x128xf32, #tpu.memory_space<vmem>> -> memref<1x128xf32, #tpu.memory_space<vmem>>
    %47 = tpu.memref_slice %arg6[%c5_i32_20] : memref<8x!tpu.dma_semaphore, #tpu.memory_space<semaphore_mem>> -> memref<1x!tpu.dma_semaphore, #tpu.memory_space<semaphore_mem>>
    %48 = tpu.memref_squeeze %47 : memref<1x!tpu.dma_semaphore, #tpu.memory_space<semaphore_mem>> -> memref<!tpu.dma_semaphore, #tpu.memory_space<semaphore_mem>>
    tpu.enqueue_dma source(%45 : memref<1x128xf32, #tpu.memory_space<any>>) target(%46 : memref<1x128xf32, #tpu.memory_space<vmem>>) target_semaphore(%48 : memref<!tpu.dma_semaphore, #tpu.memory_space<semaphore_mem>>)
    %c6_i32_24 = arith.constant 6 : i32
    %c0_i32_25 = arith.constant 0 : i32
    %49 = tpu.memref_slice %arg2[%21, %c0_i32_25] : memref<64x128xf32, #tpu.memory_space<any>> -> memref<1x128xf32, #tpu.memory_space<any>>
    %c6_i32_26 = arith.constant 6 : i32
    %c0_i32_27 = arith.constant 0 : i32
    %50 = tpu.memref_slice %arg5[%c6_i32_26, %c0_i32_27] : memref<8x128xf32, #tpu.memory_space<vmem>> -> memref<1x128xf32, #tpu.memory_space<vmem>>
    %51 = tpu.memref_slice %arg6[%c6_i32_24] : memref<8x!tpu.dma_semaphore, #tpu.memory_space<semaphore_mem>> -> memref<1x!tpu.dma_semaphore, #tpu.memory_space<semaphore_mem>>
    %52 = tpu.memref_squeeze %51 : memref<1x!tpu.dma_semaphore, #tpu.memory_space<semaphore_mem>> -> memref<!tpu.dma_semaphore, #tpu.memory_space<semaphore_mem>>
    tpu.enqueue_dma source(%49 : memref<1x128xf32, #tpu.memory_space<any>>) target(%50 : memref<1x128xf32, #tpu.memory_space<vmem>>) target_semaphore(%52 : memref<!tpu.dma_semaphore, #tpu.memory_space<semaphore_mem>>)
    %c7_i32_28 = arith.constant 7 : i32
    %c0_i32_29 = arith.constant 0 : i32
    %53 = tpu.memref_slice %arg2[%24, %c0_i32_29] : memref<64x128xf32, #tpu.memory_space<any>> -> memref<1x128xf32, #tpu.memory_space<any>>
    %c7_i32_30 = arith.constant 7 : i32
    %c0_i32_31 = arith.constant 0 : i32
    %54 = tpu.memref_slice %arg5[%c7_i32_30, %c0_i32_31] : memref<8x128xf32, #tpu.memory_space<vmem>> -> memref<1x128xf32, #tpu.memory_space<vmem>>
    %55 = tpu.memref_slice %arg6[%c7_i32_28] : memref<8x!tpu.dma_semaphore, #tpu.memory_space<semaphore_mem>> -> memref<1x!tpu.dma_semaphore, #tpu.memory_space<semaphore_mem>>
    %56 = tpu.memref_squeeze %55 : memref<1x!tpu.dma_semaphore, #tpu.memory_space<semaphore_mem>> -> memref<!tpu.dma_semaphore, #tpu.memory_space<semaphore_mem>>
    tpu.enqueue_dma source(%53 : memref<1x128xf32, #tpu.memory_space<any>>) target(%54 : memref<1x128xf32, #tpu.memory_space<vmem>>) target_semaphore(%56 : memref<!tpu.dma_semaphore, #tpu.memory_space<semaphore_mem>>)
    %c0_i32_32 = arith.constant 0 : i32
    %c0_i32_33 = arith.constant 0 : i32
    %57 = tpu.memref_slice %arg2[%3, %c0_i32_33] : memref<64x128xf32, #tpu.memory_space<any>> -> memref<1x128xf32, #tpu.memory_space<any>>
    %c0_i32_34 = arith.constant 0 : i32
    %c0_i32_35 = arith.constant 0 : i32
    %58 = tpu.memref_slice %arg5[%c0_i32_34, %c0_i32_35] : memref<8x128xf32, #tpu.memory_space<vmem>> -> memref<1x128xf32, #tpu.memory_space<vmem>>
    %59 = tpu.memref_slice %arg6[%c0_i32_32] : memref<8x!tpu.dma_semaphore, #tpu.memory_space<semaphore_mem>> -> memref<1x!tpu.dma_semaphore, #tpu.memory_space<semaphore_mem>>
    %60 = tpu.memref_squeeze %59 : memref<1x!tpu.dma_semaphore, #tpu.memory_space<semaphore_mem>> -> memref<!tpu.dma_semaphore, #tpu.memory_space<semaphore_mem>>
    tpu.wait_dma2 semaphore(%60 : memref<!tpu.dma_semaphore, #tpu.memory_space<semaphore_mem>>) src(%57 : memref<1x128xf32, #tpu.memory_space<any>>) dst(%58 : memref<1x128xf32, #tpu.memory_space<vmem>>)
    %c1_i32_36 = arith.constant 1 : i32
    %c0_i32_37 = arith.constant 0 : i32
    %61 = tpu.memref_slice %arg2[%6, %c0_i32_37] : memref<64x128xf32, #tpu.memory_space<any>> -> memref<1x128xf32, #tpu.memory_space<any>>
    %c1_i32_38 = arith.constant 1 : i32
    %c0_i32_39 = arith.constant 0 : i32
    %62 = tpu.memref_slice %arg5[%c1_i32_38, %c0_i32_39] : memref<8x128xf32, #tpu.memory_space<vmem>> -> memref<1x128xf32, #tpu.memory_space<vmem>>
    %63 = tpu.memref_slice %arg6[%c1_i32_36] : memref<8x!tpu.dma_semaphore, #tpu.memory_space<semaphore_mem>> -> memref<1x!tpu.dma_semaphore, #tpu.memory_space<semaphore_mem>>
    %64 = tpu.memref_squeeze %63 : memref<1x!tpu.dma_semaphore, #tpu.memory_space<semaphore_mem>> -> memref<!tpu.dma_semaphore, #tpu.memory_space<semaphore_mem>>
    tpu.wait_dma2 semaphore(%64 : memref<!tpu.dma_semaphore, #tpu.memory_space<semaphore_mem>>) src(%61 : memref<1x128xf32, #tpu.memory_space<any>>) dst(%62 : memref<1x128xf32, #tpu.memory_space<vmem>>)
    %c2_i32_40 = arith.constant 2 : i32
    %c0_i32_41 = arith.constant 0 : i32
    %65 = tpu.memref_slice %arg2[%9, %c0_i32_41] : memref<64x128xf32, #tpu.memory_space<any>> -> memref<1x128xf32, #tpu.memory_space<any>>
    %c2_i32_42 = arith.constant 2 : i32
    %c0_i32_43 = arith.constant 0 : i32
    %66 = tpu.memref_slice %arg5[%c2_i32_42, %c0_i32_43] : memref<8x128xf32, #tpu.memory_space<vmem>> -> memref<1x128xf32, #tpu.memory_space<vmem>>
    %67 = tpu.memref_slice %arg6[%c2_i32_40] : memref<8x!tpu.dma_semaphore, #tpu.memory_space<semaphore_mem>> -> memref<1x!tpu.dma_semaphore, #tpu.memory_space<semaphore_mem>>
    %68 = tpu.memref_squeeze %67 : memref<1x!tpu.dma_semaphore, #tpu.memory_space<semaphore_mem>> -> memref<!tpu.dma_semaphore, #tpu.memory_space<semaphore_mem>>
    tpu.wait_dma2 semaphore(%68 : memref<!tpu.dma_semaphore, #tpu.memory_space<semaphore_mem>>) src(%65 : memref<1x128xf32, #tpu.memory_space<any>>) dst(%66 : memref<1x128xf32, #tpu.memory_space<vmem>>)
    %c3_i32_44 = arith.constant 3 : i32
    %c0_i32_45 = arith.constant 0 : i32
    %69 = tpu.memref_slice %arg2[%12, %c0_i32_45] : memref<64x128xf32, #tpu.memory_space<any>> -> memref<1x128xf32, #tpu.memory_space<any>>
    %c3_i32_46 = arith.constant 3 : i32
    %c0_i32_47 = arith.constant 0 : i32
    %70 = tpu.memref_slice %arg5[%c3_i32_46, %c0_i32_47] : memref<8x128xf32, #tpu.memory_space<vmem>> -> memref<1x128xf32, #tpu.memory_space<vmem>>
    %71 = tpu.memref_slice %arg6[%c3_i32_44] : memref<8x!tpu.dma_semaphore, #tpu.memory_space<semaphore_mem>> -> memref<1x!tpu.dma_semaphore, #tpu.memory_space<semaphore_mem>>
    %72 = tpu.memref_squeeze %71 : memref<1x!tpu.dma_semaphore, #tpu.memory_space<semaphore_mem>> -> memref<!tpu.dma_semaphore, #tpu.memory_space<semaphore_mem>>
    tpu.wait_dma2 semaphore(%72 : memref<!tpu.dma_semaphore, #tpu.memory_space<semaphore_mem>>) src(%69 : memref<1x128xf32, #tpu.memory_space<any>>) dst(%70 : memref<1x128xf32, #tpu.memory_space<vmem>>)
    %c4_i32_48 = arith.constant 4 : i32
    %c0_i32_49 = arith.constant 0 : i32
    %73 = tpu.memref_slice %arg2[%15, %c0_i32_49] : memref<64x128xf32, #tpu.memory_space<any>> -> memref<1x128xf32, #tpu.memory_space<any>>
    %c4_i32_50 = arith.constant 4 : i32
    %c0_i32_51 = arith.constant 0 : i32
    %74 = tpu.memref_slice %arg5[%c4_i32_50, %c0_i32_51] : memref<8x128xf32, #tpu.memory_space<vmem>> -> memref<1x128xf32, #tpu.memory_space<vmem>>
    %75 = tpu.memref_slice %arg6[%c4_i32_48] : memref<8x!tpu.dma_semaphore, #tpu.memory_space<semaphore_mem>> -> memref<1x!tpu.dma_semaphore, #tpu.memory_space<semaphore_mem>>
    %76 = tpu.memref_squeeze %75 : memref<1x!tpu.dma_semaphore, #tpu.memory_space<semaphore_mem>> -> memref<!tpu.dma_semaphore, #tpu.memory_space<semaphore_mem>>
    tpu.wait_dma2 semaphore(%76 : memref<!tpu.dma_semaphore, #tpu.memory_space<semaphore_mem>>) src(%73 : memref<1x128xf32, #tpu.memory_space<any>>) dst(%74 : memref<1x128xf32, #tpu.memory_space<vmem>>)
    %c5_i32_52 = arith.constant 5 : i32
    %c0_i32_53 = arith.constant 0 : i32
    %77 = tpu.memref_slice %arg2[%18, %c0_i32_53] : memref<64x128xf32, #tpu.memory_space<any>> -> memref<1x128xf32, #tpu.memory_space<any>>
    %c5_i32_54 = arith.constant 5 : i32
    %c0_i32_55 = arith.constant 0 : i32
    %78 = tpu.memref_slice %arg5[%c5_i32_54, %c0_i32_55] : memref<8x128xf32, #tpu.memory_space<vmem>> -> memref<1x128xf32, #tpu.memory_space<vmem>>
    %79 = tpu.memref_slice %arg6[%c5_i32_52] : memref<8x!tpu.dma_semaphore, #tpu.memory_space<semaphore_mem>> -> memref<1x!tpu.dma_semaphore, #tpu.memory_space<semaphore_mem>>
    %80 = tpu.memref_squeeze %79 : memref<1x!tpu.dma_semaphore, #tpu.memory_space<semaphore_mem>> -> memref<!tpu.dma_semaphore, #tpu.memory_space<semaphore_mem>>
    tpu.wait_dma2 semaphore(%80 : memref<!tpu.dma_semaphore, #tpu.memory_space<semaphore_mem>>) src(%77 : memref<1x128xf32, #tpu.memory_space<any>>) dst(%78 : memref<1x128xf32, #tpu.memory_space<vmem>>)
    %c6_i32_56 = arith.constant 6 : i32
    %c0_i32_57 = arith.constant 0 : i32
    %81 = tpu.memref_slice %arg2[%21, %c0_i32_57] : memref<64x128xf32, #tpu.memory_space<any>> -> memref<1x128xf32, #tpu.memory_space<any>>
    %c6_i32_58 = arith.constant 6 : i32
    %c0_i32_59 = arith.constant 0 : i32
    %82 = tpu.memref_slice %arg5[%c6_i32_58, %c0_i32_59] : memref<8x128xf32, #tpu.memory_space<vmem>> -> memref<1x128xf32, #tpu.memory_space<vmem>>
    %83 = tpu.memref_slice %arg6[%c6_i32_56] : memref<8x!tpu.dma_semaphore, #tpu.memory_space<semaphore_mem>> -> memref<1x!tpu.dma_semaphore, #tpu.memory_space<semaphore_mem>>
    %84 = tpu.memref_squeeze %83 : memref<1x!tpu.dma_semaphore, #tpu.memory_space<semaphore_mem>> -> memref<!tpu.dma_semaphore, #tpu.memory_space<semaphore_mem>>
    tpu.wait_dma2 semaphore(%84 : memref<!tpu.dma_semaphore, #tpu.memory_space<semaphore_mem>>) src(%81 : memref<1x128xf32, #tpu.memory_space<any>>) dst(%82 : memref<1x128xf32, #tpu.memory_space<vmem>>)
    %c7_i32_60 = arith.constant 7 : i32
    %c0_i32_61 = arith.constant 0 : i32
    %85 = tpu.memref_slice %arg2[%24, %c0_i32_61] : memref<64x128xf32, #tpu.memory_space<any>> -> memref<1x128xf32, #tpu.memory_space<any>>
    %c7_i32_62 = arith.constant 7 : i32
    %c0_i32_63 = arith.constant 0 : i32
    %86 = tpu.memref_slice %arg5[%c7_i32_62, %c0_i32_63] : memref<8x128xf32, #tpu.memory_space<vmem>> -> memref<1x128xf32, #tpu.memory_space<vmem>>
    %87 = tpu.memref_slice %arg6[%c7_i32_60] : memref<8x!tpu.dma_semaphore, #tpu.memory_space<semaphore_mem>> -> memref<1x!tpu.dma_semaphore, #tpu.memory_space<semaphore_mem>>
    %88 = tpu.memref_squeeze %87 : memref<1x!tpu.dma_semaphore, #tpu.memory_space<semaphore_mem>> -> memref<!tpu.dma_semaphore, #tpu.memory_space<semaphore_mem>>
    tpu.wait_dma2 semaphore(%88 : memref<!tpu.dma_semaphore, #tpu.memory_space<semaphore_mem>>) src(%85 : memref<1x128xf32, #tpu.memory_space<any>>) dst(%86 : memref<1x128xf32, #tpu.memory_space<vmem>>)
    %c0 = arith.constant 0 : index
    %c0_64 = arith.constant 0 : index
    %89 = vector.load %arg5[%c0, %c0_64] : memref<8x128xf32, #tpu.memory_space<vmem>>, vector<8x128xf32>
    %c0_65 = arith.constant 0 : index
    %c0_66 = arith.constant 0 : index
    %90 = vector.load %arg3[%c0_65, %c0_66] : memref<128x128xf32, #tpu.memory_space<vmem>>, vector<128x128xf32>
    %cst = arith.constant dense<0.000000e+00> : vector<8x128xf32>
    %91 = tpu.matmul %89, %90, %cst {dimension_numbers = #tpu.dot_dimension_numbers<[1], [0], [0], [1], [0, 0, 1, 1], [], []>} : vector<8x128xf32>, vector<128x128xf32>, vector<8x128xf32> -> vector<8x128xf32>
    %c0_67 = arith.constant 0 : index
    %c0_68 = arith.constant 0 : index
    %92 = vector.load %arg4[%c0_67, %c0_68] : memref<8x128xf32, #tpu.memory_space<vmem>>, vector<8x128xf32>
    tpu.vector_store %arg4[%c0_67, %c0_68], %91 {strides = array<i32>} : memref<8x128xf32, #tpu.memory_space<vmem>>, vector<8x128xf32>,
    return
  }
  func.func @transform_1(%arg0: i32, %arg1: memref<16xi32, #tpu.memory_space<smem>>) -> (i32, i32) {
    %c0_i32 = arith.constant 0 : i32
    %c0_i32_0 = arith.constant 0 : i32
    %c0_i32_1 = arith.constant 0 : i32
    return %c0_i32, %c0_i32_0 : i32, i32
  }
  func.func @transform_2(%arg0: i32, %arg1: memref<16xi32, #tpu.memory_space<smem>>) -> (i32, i32) {
    %c0_i32 = arith.constant 0 : i32
    %c0_i32_0 = arith.constant 0 : i32
    return %arg0, %c0_i32 : i32, i32
  }
}

</mosaic_0001>

<bundles_post_ra>
// kernel: tpu_custom_call.1
= control target key start
LH: loop header
LB: loop body
LE: loop exit
PB: predicated region body
PF: predicated region fallthrough
CT: control target
= control target key end

     0   :  { %s1298_s0 = inlined_call_operand.hbm [shape: s32[16], index: 0, kind: input, shape index: {}]   ;;  %s1299_s1 = inlined_call_operand.hbm [shape: f32[64,128], index: 1, kind: input, shape index: {}]   ;;  %s1300_s2 = inlined_call_operand.hbm [shape: f32[128,128], index: 2, kind: input, shape index: {}]   ;;  %s1301_s3 = inlined_call_operand.hbm [shape: f32[16,128], index: 3, kind: output, shape index: {}]  }
   0x1   :  { %1306 = sst [smem:[#allocation40_spill]] %s1300_s2  ;;  %s666_s14 = scalar_lea.hbm %s1298_s0, 16 }
   0x2   :  { %p667_p0 = scmp.ne.s32.totalorder %s1298_s0, %s666_s14  ;;  %p670_p1 = scmp.lt.u32.totalorder %s666_s14, %s1298_s0 }
   0x4   :  { %p672_p2 = pnand %p670_p1, %p667_p0 }
   0x6   :  { %675 = shalt.err (!%p672_p2)  }
   0x7   :  { %s982_s19 = smov [#allocation5]  }
   0x8   :  { %9 = dma.hbm_to_smem %s1298_s0, 16, %s982_s19, [#allocation4] }
   0x9   :  { %940 = dma.done.wait [#allocation4], 16 }
   0xa   :  { %941 = vsyncadd [#allocation4], 4294967280 }
   0xb   :  { %11 = sfence }
   0xc   :  { %12 = vsyncpa [#allocation7], 0 }
   0xd   :  { %13 = vsyncpa [#allocation8], 0 }
   0xe   :  { %15 = vsyncpa [#allocation8 + $0x1], 0  ;;  %s1030_s22 = smov 0   ;;  %s1032_s23 = smov 0  }
   0xf   :  { %s1034_s24 = smov 0   ;;  %s1036_s25 = smov 0  }
  0x10 LB: > { %s1051_s0 = sadd.s32 4294967295, %s980_s25   ;;  %s499_s26 = sadd.s32 4294967294, %s980_s25   ;;  %s980_s25 = sphi %s1036_s25, %s1323_s25   ;;  %s976_s24 = sphi %s1034_s24, %s1322_s24   ;;  %s972_s23 = sphi %s1032_s23, %s1321_s23   ;;  %s968_s22 = sphi %s1030_s22, %s1320_s22  }
  0x11   : > { %s1055_s27 = sadd.s32 1, %s980_s25   ;;  %s49_s28 = sadd.s32 1, %s976_s24 }
  0x12   : > { %s46_s29 = ssub.s32 %s980_s25, %s1055_s27  ;;  %p59_p3 = scmp.ne.s32.totalorder %s976_s24, %s972_s23 }
  0x13   : > { %p47_p4 = scmp.eq.s32.totalorder %s46_s29, 0  ;;  %p60_p5 = scmp.eq.s32.totalorder %s1051_s0, 1 }
  0x14   : > { %p65_p6 = scmp.ne.s32.totalorder %s972_s23, %s968_s22  ;;  %p66_p7 = scmp.eq.s32.totalorder %s499_s26, 1 }
  0x15   : > { %s1066_s30 = scalar_select %p47_p4, %s976_s24, %s49_s28  }
  0x16   : > { %p1068_p8 = por %p60_p5, %p59_p3  ;;  %p1072_p9 = por %p66_p7, %p65_p6 }
  0x17   : > { %1307 = sst [smem:[#allocation39_spill]] %s1066_s30  ;;  %p500_p10 = scmp.ge.s32.totalorder %s980_s25, 1 }
  0x18   : > { %s1308_s4 = scalar_select %p1068_p8, 1, 0 }
  0x19   : > { %s1309_s5 = scalar_select %p1072_p9, 1, 0 }
  0x1a   : > { %p73_p11 = scmp.lt.s32.totalorder %s980_s25, 3  ;;  %p1302_p12 = scmp.eq.s32.totalorder %s1051_s0, 0 }
  0x1b   : > { %s983_s7 = smov [#allocation6]   ;;  %s1312_s2 = sld [smem:[#allocation40_spill]] }
  0x1c   : > { %p1079_p13 = pnand %p500_p10, %p73_p11  ;;  %s85_s8 = sshll.u32 %s983_s7, 4  ;;  %s86_s8 = int_to_ptr.vmem [resolvable:$true] %s85_s8 }
  0x1e   : > { %s1310_s6 = scalar_select %p1079_p13, 1, 0 }
  0x1f   : > { %p608_p0 = pneg %p1079_p13 }
  0x21   : > { %p1087_p1 = pnand %p1302_p12, %p608_p0  ;;  %s676_s12 = scalar_lea.hbm %s1312_s2, 2048 }
  0x22   : > { %p677_p2 = scmp.ne.s32.totalorder %s1312_s2, %s676_s12  ;;  %p683_p6 = scmp.lt.u32.totalorder %s676_s12, %s1312_s2 }
  0x23   : > { %p678_p3 = pneg %p1087_p1 }
  0x25   : > { %p679_p4 = pnand %p678_p3, %p677_p2 }
  0x27   : > { %p680_p5 = pneg %p679_p4 }
  0x29   : > { %p685_p7 = pnand %p683_p6, %p680_p5 }
  0x2b   : > { %688 = shalt.err (!%p685_p7)
}
  0x2c   : > { %s689_s17 = scalar_lea.vmem %s86_s8, 2048  ;;  %p697_p12 = scmp.lt.s32.totalorder %s86_s8, %s86_s8 }
  0x2d   : > { %p690_p10 = scmp.ne.s32.totalorder %s86_s8, %s689_s17  ;;  %p698_p9 = scmp.lt.s32.totalorder %s689_s17, %s689_s17 }
  0x2f   : > { %p692_p11 = pnand %p690_p10, %p678_p3  ;;  %p699_p8 = por %p698_p9, %p697_p12 }
  0x31   : > { %p693_p0 = pneg %p692_p11 }
  0x33   : > { %p700_p13 = pnand %p699_p8, %p693_p0 }
  0x35   : > { %703 = shalt.err (!%p700_p13)
}
  0x36   : > { %s984_s18 = smov 128   ;;  %s985_s19 = smov 8  }
  0x37   : > { %611 = dma.hbm_to_vmem [thread:$0]  (!%p1087_p1), %s1312_s2, 2048, %s86_s8, [#allocation7], %s984_s18, %s984_s18, %s985_s19  }
  0x38   : > { %p1313_p2 = scmp.ne.s32.totalorder %s1310_s6, 0 }
  0x39   : > { %p1314_p4 = scmp.eq.s32.totalorder (!%p1313_p2), %s1051_s0, 0 }
  0x3a   : > { %101 = sbr.rel (%p1313_p2) target bundleno = 524 (0x20c), region = 24 }
  0x41   : > { %943 = dma.done.wait (%p1314_p4), [#allocation7], 2048   ;;  %p1315_p3 = pmov %p1314_p4 }
  0x42   : > { %s1305_s26 = sand.u32 1, %s972_s23   ;;  %s1115_s28 = sshll.u32 %s1051_s0, 3 }
  0x43   : > { %945 = vsyncadd (%p1315_p3), [#allocation7], 4294965248  ;;  %s1119_s29 = sshll.u32 %s1305_s26, 3  ;;  %s117_s6 = sld [smem:[#allocation5 + %s1115_s28]] }
  0x44   : > { %s986_s7 = smov [#allocation2]   ;;  %s118_s9 = sadd.s32 1, %s1115_s28 }
  0x45   : > { %s141_s8 = sshll.u32 %s986_s7, 4  ;;  %s1125_s10 = sld [smem:[#allocation5 + %s118_s9]]  ;;  %s1123_s8 = int_to_ptr.vmem [resolvable:$true] %s141_s8 }
  0x46   : > { %s120_s11 = sadd.s32 2, %s1115_s28  ;;  %s987_s12 = smov [#allocation2 + $0x1]  }
  0x47   : > { %s156_s13 = sshll.u32 %s987_s12, 4  ;;  %s1128_s14 = sld [smem:[#allocation5 + %s120_s11]]  ;;  %s1130_s13 = int_to_ptr.vmem [resolvable:$true] %s156_s13 }
  0x48   : > { %s1138_s7 = scalar_lea.hbm %s1299_s1, 1024 }
  0x49   : > { %s506_s15 = sshll.u32 %s117_s6, 4 }
  0x4a   : > { %s133_s18 = scalar_lea.hbm %s1299_s1, %s506_s15 }
  0x4b   : > { %s704_s19 = scalar_lea.hbm %s133_s18, 16  ;;  %p707_p9 = scmp.lt.u32.totalorder %s133_s18, %s1299_s1 }
  0x4c   : > { %p705_p8 = scmp.ne.s32.totalorder %s133_s18, %s704_s19  ;;  %p708_p12 = scmp.lt.u32.totalorder %s1138_s7, %s704_s19 }
  0x4d   : > { %p710_p1 = scmp.lt.u32.totalorder %s704_s19, %s133_s18 }
  0x4e   : > { %p709_p13 = por %p708_p12, %p707_p9 }
  0x50   : > { %p711_p5 = por %p710_p1, %p709_p13 }
  0x52   : > { %p712_p6 = pnand %p711_p5, %p705_p8 }
  0x54   : > { %715 = shalt.err (!%p712_p6)  }
  0x55   : > { %s716_s6 = scalar_lea.vmem %s1123_s8, 16  ;;  %s1147_s11 = scalar_lea.vmem %s1123_s8, 128 }
  0x56   : > { %p717_p7 = scmp.ne.s32.totalorder %s1123_s8, %s716_s6  ;;  %p721_p10 = scmp.lt.s32.totalorder %s1123_s8, %s1123_s8 }
  0x57   : > { %p722_p11 = scmp.lt.s32.totalorder %s1147_s11, %s716_s6 }
  0x59   : > { %p723_p0 = por %p722_p11, %p721_p10 }
  0x5b   : > { %p724_p2 = pnand %p723_p0, %p717_p7 }
  0x5d   : > { %727 = shalt.err (!%p724_p2)  }
  0x5e   : > { %144 = dma.hbm_to_vmem [thread:$0]  %s133_s18, 16, %s1123_s8, [#allocation3] }
  0x5f   : > { %s507_s26 = sshll.u32 %s1125_s10, 4  ;;  %s988_s12 = smov [#allocation2 + $0x2]  }
  0x60   : > { %s171_s15 = sshll.u32 %s988_s12, 4  ;;  %s146_s19 = scalar_lea.hbm %s1299_s1, %s507_s26  ;;  %s1157_s15 = int_to_ptr.vmem [resolvable:$true] %s171_s15 }
  0x61   : > { %s728_s20 = scalar_lea.hbm %s146_s19, 16  ;;  %p731_p3 = scmp.lt.u32.totalorder %s146_s19, %s1299_s1 }
  0x62   : > { %p729_p4 = scmp.ne.s32.totalorder %s146_s19, %s728_s20  ;;  %p732_p8 = scmp.lt.u32.totalorder %s1138_s7, %s728_s20 }
  0x63   : > { %p734_p12 = scmp.lt.u32.totalorder %s728_s20, %s146_s19 }
  0x64   : > { %p733_p9 = por %p732_p8, %p731_p3 }
  0x66   : > { %p735_p13 = por %p734_p12, %p733_p9 }
  0x68   : > { %p736_p1 = pnand %p735_p13, %p729_p4 }
  0x6a   : > { %739 = shalt.err (!%p736_p1)  }
  0x6b   : > { %s740_s10 = scalar_lea.vmem %s1130_s13, 16  ;;  %p745_p6 = scmp.lt.s32.totalorder %s1130_s13, %s1123_s8 }
  0x6c   : > { %p741_p5 = scmp.ne.s32.totalorder %s1130_s13, %s740_s10  ;;  %p746_p7 = scmp.lt.s32.totalorder %s1147_s11, %s740_s10 }
  0x6e   : > { %p747_p10 = por %p746_p7, %p745_p6 }
  0x70   : > { %p748_p11 = pnand %p747_p10, %p741_p5 }
  0x72   : > { %751 = shalt.err (!%p748_p11)  }
  0x73   : > { %159 = dma.hbm_to_vmem [thread:$0]  %s146_s19, 16, %s1130_s13, [#allocation3 + $0x1] }
  0x74   : > { %s508_s18 = sshll.u32 %s1128_s14, 4  ;;  %s122_s6 = sadd.s32 3, %s1115_s28 }
  0x75   : > { %s161_s16 = scalar_lea.hbm %s1299_s1, %s508_s18  ;;  %s1174_s17 = sld [smem:[#allocation5 + %s122_s6]] }
  0x76   : > { %s752_s20 = scalar_lea.hbm %s161_s16, 16  ;;  %p755_p2 = scmp.lt.u32.totalorder %s161_s16, %s1299_s1 }
  0x77   : > { %p753_p0 = scmp.ne.s32.totalorder %s161_s16, %s752_s20  ;;  %p756_p4 = scmp.lt.u32.totalorder %s1138_s7, %s752_s20 }
  0x78   : > { %p758_p8 = scmp.lt.u32.totalorder %s752_s20, %s161_s16 }
  0x79   : > { %p757_p3 = por %p756_p4, %p755_p2 }
  0x7b   : > { %p759_p9 = por %p758_p8, %p757_p3 }
  0x7d   : > { %p760_p12 = pnand %p759_p9, %p753_p0 }
  0x7f   : > { %763 = shalt.err (!%p760_p12)  }
  0x80   : > { %s764_s13 = scalar_lea.vmem %s1157_s15, 16  ;;  %p769_p1 = scmp.lt.s32.totalorder %s1157_s15, %s1123_s8 }
  0x81   : > { %p765_p13 = scmp.ne.s32.totalorder %s1157_s15, %s764_s13  ;;  %p770_p5 = scmp.lt.s32.totalorder %s1147_s11, %s764_s13 }
  0x83   : > { %p771_p6 = por %p770_p5, %p769_p1 }
  0x85   : > { %p772_p7 = pnand %p771_p6, %p765_p13 }
  0x87   : > { %775 = shalt.err (!%p772_p7)  }
  0x88   : > { %174 = dma.hbm_to_vmem [thread:$0]  %s161_s16, 16, %s1157_s15, [#allocation3 + $0x2] }
  0x89   : > { %s124_s14 = sadd.s32 4, %s1115_s28  ;;  %s989_s19 = smov [#allocation2 + $0x3]  }
  0x8a   : > { %s186_s10 = sshll.u32 %s989_s19, 4  ;;  %s125_s18 = sld [smem:[#allocation5 + %s124_s14]]  ;;  %s187_s10 = int_to_ptr.vmem [resolvable:$true] %s186_s10 }
  0x8b   : > { %s990_s6 = smov [#allocation2 + $0x4]   ;;  %s126_s12 = sadd.s32 5, %s1115_s28 }
  0x8c   : > { %s201_s26 = sshll.u32 %s990_s6, 4  ;;  %s509_s20 = sshll.u32 %s1174_s17, 4  ;;  %s1189_s26 = int_to_ptr.vmem [resolvable:$true] %s201_s26 }
  0x8d   : > { %s176_s13 = scalar_lea.hbm %s1299_s1, %s509_s20  ;;  %s1194_s2 = sld [smem:[#allocation5 + %s126_s12]] }
  0x8e   : > { %s776_s30 = scalar_lea.hbm %s176_s13, 16  ;;  %p779_p11 = scmp.lt.u32.totalorder %s176_s13, %s1299_s1 }
  0x8f   : > { %p777_p10 = scmp.ne.s32.totalorder %s176_s13, %s776_s30  ;;  %p780_p0 = scmp.lt.u32.totalorder %s1138_s7, %s776_s30 }
  0x90   : > { %p782_p4 = scmp.lt.u32.totalorder %s776_s30, %s176_s13 }
  0x91   : > { %p781_p2 = por %p780_p0, %p779_p11 }
  0x93   : > { %p783_p3 = por %p782_p4, %p781_p2 }
  0x95   : > { %p784_p8 = pnand %p783_p3, %p777_p10 }
  0x97   : > { %787 = shalt.err (!%p784_p8)  }
  0x98   : > { %s788_s17 = scalar_lea.vmem %s187_s10, 16  ;;  %p793_p12 = scmp.lt.s32.totalorder %s187_s10, %s1123_s8 }
  0x99   : > { %p789_p9 = scmp.ne.s32.totalorder %s187_s10, %s788_s17  ;;  %p794_p13 = scmp.lt.s32.totalorder %s1147_s11, %s788_s17 }
  0x9b   : > { %p795_p1 = por %p794_p13, %p793_p12 }
  0x9d   : > { %p796_p5 = pnand %p795_p1, %p789_p9 }
  0x9f   : > { %799 = shalt.err (!%p796_p5)  }
  0xa0   : > { %189 = dma.hbm_to_vmem [thread:$0]  %s176_s13, 16, %s187_s10, [#allocation3 + $0x3] }
  0xa1   : > { %s510_s14 = sshll.u32 %s125_s18, 4  ;;  %s991_s30 = smov [#allocation2 + $0x5]  }
  0xa2   : > { %s191_s12 = scalar_lea.hbm %s1299_s1, %s510_s14  ;;  %s216_s20 = sshll.u32 %s991_s30, 4  ;;  %s217_s20 = int_to_ptr.vmem [resolvable:$true] %s216_s20 }
  0xa3   : > { %s800_s21 = scalar_lea.hbm %s191_s12, 16  ;;  %p803_p7 = scmp.lt.u32.totalorder %s191_s12, %s1299_s1 }
  0xa4   : > { %p801_p6 = scmp.ne.s32.totalorder %s191_s12, %s800_s21  ;;  %p804_p10 = scmp.lt.u32.totalorder %s1138_s7, %s800_s21 }
  0xa5   : > { %p806_p0 = scmp.lt.u32.totalorder %s800_s21, %s191_s12 }
  0xa6   : > { %p805_p11 = por %p804_p10, %p803_p7 }
  0xa8   : > { %p807_p2 = por %p806_p0, %p805_p11 }
  0xaa   : > { %p808_p4 = pnand %p807_p2, %p801_p6 }
  0xac   : > { %811 = shalt.err (!%p808_p4)  }
  0xad   : > { %s812_s10 = scalar_lea.vmem %s1189_s26, 16  ;;  %p817_p8 = scmp.lt.s32.totalorder %s1189_s26, %s1123_s8 }
  0xae   : > { %p813_p3 = scmp.ne.s32.totalorder %s1189_s26, %s812_s10  ;;  %p818_p9 = scmp.lt.s32.totalorder %s1147_s11, %s812_s10 }
  0xb0   : > { %p819_p12 = por %p818_p9, %p817_p8 }
  0xb2   : > { %p820_p13 = pnand %p819_p12, %p813_p3 }
  0xb4   : > { %823 = shalt.err (!%p820_p13)  }
  0xb5   : > { %204 = dma.hbm_to_vmem [thread:$0]  %s191_s12, 16, %s1189_s26, [#allocation3 + $0x4] }
  0xb6   : > { %s128_s18 = sadd.s32 6, %s1115_s28  ;;  %s511_s13 = sshll.u32 %s1194_s2, 4 }
  0xb7   : > { %s129_s16 = sld [smem:[#allocation5 + %s128_s18]]  ;;  %s206_s19 = scalar_lea.hbm %s1299_s1, %s511_s13 }
  0xb8   : > { %s824_s6 = scalar_lea.hbm %s206_s19, 16  ;;  %p827_p5 = scmp.lt.u32.totalorder %s206_s19, %s1299_s1 }
  0xb9   : > { %p825_p1 = scmp.ne.s32.totalorder %s206_s19, %s824_s6  ;;  %p828_p6 = scmp.lt.u32.totalorder %s1138_s7, %s824_s6 }
  0xba   : > { %p830_p10 = scmp.lt.u32.totalorder %s824_s6, %s206_s19 }
  0xbb   : > { %p829_p7 = por %p828_p6, %p827_p5 }
  0xbd   : > { %p831_p11 = por %p830_p10, %p829_p7 }
  0xbf   : > { %p832_p0 = pnand %p831_p11, %p825_p1 }
  0xc1   : > { %835 = shalt.err (!%p832_p0)  }
  0xc2   : > { %s836_s26 = scalar_lea.vmem %s217_s20, 16  ;;  %p841_p4 = scmp.lt.s32.totalorder %s217_s20, %s1123_s8 }
  0xc3   : > { %p837_p2 = scmp.ne.s32.totalorder %s217_s20, %s836_s26  ;;  %p842_p3 = scmp.lt.s32.totalorder %s1147_s11, %s836_s26 }
  0xc5   : > { %p843_p8 = por %p842_p3, %p841_p4 }
  0xc7   : > { %p844_p9 = pnand %p843_p8, %p837_p2 }
  0xc9   : > { %847 = shalt.err (!%p844_p9)  }
  0xca   : > { %219 = dma.hbm_to_vmem [thread:$0]  %s206_s19, 16, %s217_s20, [#allocation3 + $0x5] }
  0xcb   : > { %s992_s2 = smov [#allocation2 + $0x6]   ;;  %s130_s9 = sadd.s32 7, %s1115_s28 }
  0xcc   : > { %s231_s12 = sshll.u32 %s992_s2, 4  ;;  %s131_s15 = sld [smem:[#allocation5 + %s130_s9]]  ;;  %s232_s12 = int_to_ptr.vmem [resolvable:$true] %s231_s12 }
  0xcd   : > { %s512_s10 = sshll.u32 %s129_s16, 4  ;;  %s993_s18 = smov [#allocation2 + $0x7]  }
  0xce   : > { %s246_s13 = sshll.u32 %s993_s18, 4  ;;  %s221_s6 = scalar_lea.hbm %s1299_s1, %s512_s10  ;;  %s247_s13 = int_to_ptr.vmem [resolvable:$true] %s246_s13 }
  0xcf   : > { %s848_s30 = scalar_lea.hbm %s221_s6, 16  ;;  %p851_p13 = scmp.lt.u32.totalorder %s221_s6, %s1299_s1 }
  0xd0   : > { %p849_p12 = scmp.ne.s32.totalorder %s221_s6, %s848_s30  ;;  %p852_p1 = scmp.lt.u32.totalorder %s1138_s7, %s848_s30 }
  0xd1   : > { %p854_p6 = scmp.lt.u32.totalorder %s848_s30, %s221_s6 }
  0xd2   : > { %p853_p5 = por %p852_p1, %p851_p13 }
  0xd4   : > { %p855_p7 = por %p854_p6, %p853_p5 }
  0xd6   : > { %p856_p10 = pnand %p855_p7, %p849_p12 }
  0xd8   : > { %859 = shalt.err (!%p856_p10)  }
  0xd9   : > { %s860_s28 = scalar_lea.vmem %s232_s12, 16  ;;  %p865_p0 = scmp.lt.s32.totalorder %s232_s12, %s1123_s8 }
  0xda   : > { %p861_p11 = scmp.ne.s32.totalorder %s232_s12, %s860_s28  ;;  %p866_p2 = scmp.lt.s32.totalorder %s1147_s11, %s860_s28 }
  0xdc   : > { %p867_p4 = por %p866_p2, %p865_p0 }
  0xde   : > { %p868_p3 = pnand %p867_p4, %p861_p11 }
  0xe0   : > { %871 = shalt.err (!%p868_p3)  }
  0xe1   : > { %234 = dma.hbm_to_vmem [thread:$0]  %s221_s6, 16, %s232_s12, [#allocation3 + $0x6] }
  0xe2   : > { %s513_s20 = sshll.u32 %s131_s15, 4 }
  0xe3   : > { %s236_s2 = scalar_lea.hbm %s1299_s1, %s513_s20 }
  0xe4   : > { %s872_s9 = scalar_lea.hbm %s236_s2, 16  ;;  %p875_p9 = scmp.lt.u32.totalorder %s236_s2, %s1299_s1 }
  0xe5   : > { %p873_p8 = scmp.ne.s32.totalorder %s236_s2, %s872_s9  ;;  %p876_p12 = scmp.lt.u32.totalorder %s1138_s7, %s872_s9 }
  0xe6   : > { %p878_p1 = scmp.lt.u32.totalorder %s872_s9, %s236_s2 }
  0xe7   : > { %p877_p13 = por %p876_p12, %p875_p9 }
  0xe9   : > { %p879_p5 = por %p878_p1, %p877_p13 }
  0xeb   : > { %p880_p6 = pnand %p879_p5, %p873_p8 }
  0xed   : > { %883 = shalt.err (!%p880_p6)  }
  0xee   : > { %s884_s12 = scalar_lea.vmem %s247_s13, 16  ;;  %p889_p10 = scmp.lt.s32.totalorder %s247_s13, %s1123_s8 }
  0xef   : > { %p885_p7 = scmp.ne.s32.totalorder %s247_s13, %s884_s12  ;;  %p890_p11 = scmp.lt.s32.totalorder %s1147_s11, %s884_s12 }
  0xf1   : > { %p891_p0 = por %p890_p11, %p889_p10 }
  0xf3   : > { %p892_p2 = pnand %p891_p0, %p885_p7 }
  0xf5   : > { %895 = shalt.err (!%p892_p2)  }
  0xf6   : > { %249 = dma.hbm_to_vmem [thread:$0]  %s236_s2, 16, %s247_s13, [#allocation3 + $0x7] }
  0xf7   : > { %s115_s15 = scalar_lea.vmem [#allocation9], %s1119_s29 }
  0xf8   : > { %946 = dma.done.wait [#allocation3], 16 }
  0xf9   : > { %947 = vsyncadd [#allocation3], 4294967280 }
  0xfa   : > { %948 = dma.done.wait [#allocation3 + $0x1], 16 }
  0xfb   : > { %949 = vsyncadd [#allocation3 + $0x1], 4294967280 }
  0xfc   : > { %950 = dma.done.wait [#allocation3 + $0x2], 16 }
  0xfd   : > { %951 = vsyncadd [#allocation3 + $0x2], 4294967280 }
  0xfe   : > { %952 = dma.done.wait [#allocation3 + $0x3], 16 }
  0xff   : > { %953 = vsyncadd [#allocation3 + $0x3], 4294967280 }
 0x100   : > { %954 = dma.done.wait [#allocation3 + $0x4], 16 }
 0x101   : > { %955 = vsyncadd [#allocation3 + $0x4], 4294967280 }
 0x102   : > { %956 = dma.done.wait [#allocation3 + $0x5], 16 }
 0x103   : > { %957 = vsyncadd [#allocation3 + $0x5], 4294967280 }
 0x104   : > { %958 = dma.done.wait [#allocation3 + $0x6], 16 }
 0x105   : > { %959 = vsyncadd [#allocation3 + $0x6], 4294967280 }
 0x106   : > { %960 = dma.done.wait [#allocation3 + $0x7], 16 }
 0x107   : > { %961 = vsyncadd [#allocation3 + $0x7], 4294967280  ;;  %v994_v0 = vmov 0.0|0.0   ;;  %vm995_vm0 = vmmov 0   ;;  %v996_v1 = vmov 0.0   ;;  %v268_v2 = vld [vmem:[#allocation6] sm:$0xff] }
 0x108   : > { %578 = vmatprep.subr.bf16.mxu0 %v994_v0  ;;  %575 = vmatprep.mubr.msk.f32.mxu0 %vm995_vm0, %v996_v1  ;;  %v269_v3 = vld [vmem:[#allocation6 + $0x8] sm:$0xff]  ;;  %v270_v4 = vld [vmem:[#allocation6 + $0x10] sm:$0xff]  ;;  %v271_v6 = vld [vmem:[#allocation6 + $0x18] sm:$0xff]  ;;  %s515_s8 = sshll.u32 %s1051_s0, 7  ;;  %s369_s7 = sshll.u32 %s115_s15, 4  ;;  %s1254_s7 = int_to_ptr.vmem [resolvable:$true] %s369_s7 }
 0x109   : > { %v579_v5 = vpack.c.bf16 %v269_v3, %v268_v2  ;;  %v582_v7 = vpack.c.bf16 %v271_v6, %v270_v4  ;;  %v272_v8 = vld [vmem:[#allocation6 + $0x20] sm:$0xff]  ;;  %v273_v9 = vld [vmem:[#allocation6 + $0x28] sm:$0xff]  ;;  %v274_v11 = vld [vmem:[#allocation6 + $0x30] sm:$0xff]  ;;  %s1252_s17 = scalar_lea.hbm %s1301_s3, %s515_s8  ;;  %s1316_s14 = sand.u32 1, %s972_s23  }
 0x10a   : > { %v585_v10 = vpack.c.bf16 %v273_v9, %v272_v8  ;;  %v275_v12 = vld [vmem:[#allocation6 + $0x38] sm:$0xff]  ;;  %v276_v14 = vld [vmem:[#allocation6 + $0x40] sm:$0xff]  ;;  %v277_v15 = vld [vmem:[#allocation6 + $0x48] sm:$0xff]  ;;  %s356_s6 = scalar_lea.sflag [#allocation8], %s1316_s14  ;;  %s896_s30 = scalar_lea.vmem %s1254_s7, 128 }
 0x10b   : > { %580 = vmatpush3.bf16.msra.mxu0 %v579_v5  ;;  %v588_v13 = vpack.c.bf16 %v275_v12, %v274_v11  ;;  %v591_v16 = vpack.c.bf16 %v277_v15, %v276_v14  ;;  %v278_v17 = vld [vmem:[#allocation6 + $0x50] sm:$0xff]  ;;  %v279_v18 = vld [vmem:[#allocation6 + $0x58] sm:$0xff]  ;;  %v280_v20 = vld [vmem:[#allocation6 + $0x60] sm:$0xff]  ;;  %p897_p4 = scmp.ne.s32.totalorder %s1254_s7, %s896_s30  ;;  %p1317_p3 = scmp.ne.s32.totalorder %s1308_s4, 0 }
 0x10c   : > { %581 = vmatprep.subr.bf16.mxu0 %v994_v0  ;;  %v594_v19 = vpack.c.bf16 %v279_v18, %v278_v17  ;;  %v281_v21 = vld [vmem:[#allocation6 + $0x68] sm:$0xff]  ;;  %v282_v23 = vld [vmem:[#allocation6 + $0x70] sm:$0xff]  ;;  %v283_v24 = vld [vmem:[#allocation6 + $0x78] sm:$0xff]  ;;  %s997_s0 = smov [#allocation9]  }
 0x10d   : > { %v597_v22 = vpack.c.bf16 %v281_v21, %v280_v20  ;;  %v600_v25 = vpack.c.bf16 %v283_v24, %v282_v23  ;;  %v267_v26 = vld [vmem:[#allocation2] sm:$0xff]  ;;  %p898_p8 = pnand %p897_p4, %p1317_p3  ;;  %s900_s21 = sshll.u32 %s997_s0, 4  ;;  %s901_s21 = int_to_ptr.vmem [resolvable:$false] %s900_s21 }
 0x10e   : > { %s902_s26 = scalar_lea.vmem %s901_s21, 256  ;;  %p903_p12 = scmp.lt.s32.totalorder %s1254_s7, %s901_s21 }
 0x10f   : > { %583 = vmatpush3.bf16.msra.mxu0 %v582_v7  ;;  %p899_p9 = pneg %p898_p8  ;;  %p904_p13 = scmp.lt.s32.totalorder %s902_s26, %s896_s30 }
 0x110   : > { %584 = vmatprep.subr.bf16.mxu0 %v994_v0 }
 0x111   : > { %p905_p1 = por %p904_p13, %p903_p12 }
 0x113   : > { %586 = vmatpush3.bf16.msra.mxu0 %v585_v10  ;;  %p906_p5 = pnand %p905_p1, %p899_p9 }
 0x114   : > { %587 = vmatprep.subr.bf16.mxu0 %v994_v0 }
 0x117   : > { %589 = vmatpush3.bf16.msra.mxu0 %v588_v13 }
 0x118   : > { %590 = vmatprep.subr.bf16.mxu0 %v994_v0 }
 0x11b   : > { %592 = vmatpush3.bf16.msra.mxu0 %v591_v16 }
 0x11c   : > { %593 = vmatprep.subr.bf16.mxu0 %v994_v0 }
 0x11f   : > { %595 = vmatpush3.bf16.msra.mxu0 %v594_v19 }
 0x120   : > { %596 = vmatprep.subr.bf16.mxu0 %v994_v0 }
 0x123   : > { %598 = vmatpush3.bf16.msra.mxu0 %v597_v22 }
 0x124   : > { %599 = vmatprep.subr.bf16.mxu0 %v994_v0 }
 0x127   : > { %601 = vmatpush3.bf16.msra.mxu0 %v600_v25 }
 0x12a   : > { %576 = vmatmul.mubr.f32.vlgmr.msra.gmra.mrb[0].mxu0 %v267_v26 }
 0x1fd   : > { %v350_v27 = vpop.f32.mrb[0].mxu0 }
 0x1fe   : > { %354 = vst [vmem:[%s115_s15] sm:$0xff] %v350_v27  ;;  %v577_v28 = vpop.f32.mrb[1].mxu0 }
 0x1ff   : > { %909 = shalt.err (!%p906_p5)
}
 0x200   : > { %s910_s29 = scalar_lea.hbm %s1252_s17, 128  ;;  %s914_s16 = scalar_lea.hbm %s1301_s3, 256 }
 0x201   : > { %p911_p6 = scmp.ne.s32.totalorder %s1252_s17, %s910_s29  ;;  %p915_p11 = scmp.lt.u32.totalorder %s1252_s17, %s1301_s3 }
 0x202   : > { %p916_p0 = scmp.lt.u32.totalorder %s914_s16, %s910_s29  ;;  %p918_p4 = scmp.lt.u32.totalorder %s910_s29, %s1252_s17 }
 0x203   : > { %p912_p7 = pnand %p911_p6, %p1317_p3 }
 0x204   : > { %p917_p2 = por %p916_p0, %p915_p11 }
 0x205   : > { %p913_p10 = pneg %p912_p7 }
 0x206   : > { %p919_p8 = por %p918_p4, %p917_p2 }
 0x208   : > { %p920_p9 = pnand %p919_p8, %p913_p10 }
 0x20a   : > { %923 = shalt.err (!%p920_p9)
}
 0x20b   : > { %606 = dma.vmem_to_hbm [thread:$0]  (%p1317_p3), %s1254_s7, 128, %s1252_s17, %s356_s6  }
 0x20c PF: > { %p618_p12 = scmp.ge.s32.totalorder %s980_s25, 2  ;;  %s381_s9 = sand.u32 1, %s968_s22  }
 0x20d   : > { %p1318_p13 = scmp.ne.s32.totalorder %s1309_s5, 0  ;;  %s382_s10 = scalar_lea.sflag [#allocation8], %s381_s9 }
 0x20f   : > { %p613_p1 = pnand %p618_p12, %p1318_p13 }
 0x211   : > { %963 = dma.done.wait (!%p613_p1), %s382_s10, 128  }
 0x212   : > { %965 = vsyncadd (!%p613_p1), %s382_s10, 4294967168  ;;  %s1319_s18 = sld [smem:[#allocation39_spill]]  ;;  %p18_p5 = scmp.ge.s32.totalorder %s1055_s27, 4  }
 0x213   : > { %s1320_s22 = smov %s972_s23  ;;  %s1321_s23 = smov %s976_s24 }
 0x214   : > { %s1323_s25 = smov %s1055_s27  ;;  %20 = sbr.rel (!%p18_p5) target bundleno = 16 (0x10), region = 122 }
 0x218   : > { %s1322_s24 = smov %s1319_s18 }
 0x21b   :  { %387 = vsyncpa [#allocation7], 1 }
 0x21c   :  { %389 = vsyncpa [#allocation7 + $0x1], 1 }
 0x21d   :  { %390 = vsyncpa [#allocation8], 1 }
 0x21e   :  { %392 = vsyncpa [#allocation8 + $0x1], 1 }
 0x21f   :  { %393 = vsyncmov [#allocation3] }
 0x222   :  { %s394_s25 = vpop.sfrf %393 }
 0x223   :  { %p518_p3 = scmp.ne.s32.totalorder %s394_s25, 0 }
 0x225   :  { %398 = shalt.err (%p518_p3)  }
 0x226   :  { %400 = vsyncmov [#allocation3 + $0x1] }
 0x229   :  { %s401_s4 = vpop.sfrf %400 }
 0x22a   :  { %p519_p6 = scmp.ne.s32.totalorder %s401_s4, 0 }
 0x22c   :  { %405 = shalt.err (%p519_p6)  }
 0x22d   :  { %407 = vsyncmov [#allocation3 + $0x2] }
 0x230   :  { %s408_s5 = vpop.sfrf %407 }
 0x231   :  { %p520_p7 = scmp.ne.s32.totalorder %s408_s5, 0 }
 0x233   :  { %412 = shalt.err (%p520_p7)  }
 0x234   :  { %414 = vsyncmov [#allocation3 + $0x3] }
 0x237   :  { %s415_s12 = vpop.sfrf %414 }
 0x238   :  { %p521_p10 = scmp.ne.s32.totalorder %s415_s12, 0 }
 0x23a   :  { %419 = shalt.err (%p521_p10)  }
 0x23b   :  { %421 = vsyncmov [#allocation3 + $0x4] }
 0x23e   :  { %s422_s1 = vpop.sfrf %421 }
 0x23f   :  { %p522_p11 = scmp.ne.s32.totalorder %s422_s1, 0 }
 0x241   :  { %426 = shalt.err (%p522_p11)  }
 0x242   :  { %428 = vsyncmov [#allocation3 + $0x5] }
 0x245   :  { %s429_s3 = vpop.sfrf %428 }
 0x246   :  { %p523_p0 = scmp.ne.s32.totalorder %s429_s3, 0 }
 0x248   :  { %433 = shalt.err (%p523_p0)  }
 0x249   :  { %435 = vsyncmov [#allocation3 + $0x6] }
 0x24c   :  { %s436_s22 = vpop.sfrf %435 }
 0x24d   :  { %p524_p2 = scmp.ne.s32.totalorder %s436_s22, 0 }
 0x24f   :  { %440 = shalt.err (%p524_p2)  }
 0x250   :  { %442 = vsyncmov [#allocation3 + $0x7] }
 0x253   :  { %s443_s23 = vpop.sfrf %442 }
 0x254   :  { %p525_p4 = scmp.ne.s32.totalorder %s443_s23, 0 }
 0x256   :  { %447 = shalt.err (%p525_p4)  }

</bundles_post_ra>
